<compile_context>
chip_gen: v7x
topology: tpu7x:2x2x1
jax: 0.10.0
libtpu: 0.0.40
codegen_flags: <defaults>
</compile_context>

<pallas_src>
import numpy as np
import jax
import jax.numpy as jnp
from jax.experimental import pallas as pl
from jax.experimental.pallas import tpu as pltpu


# --------------------------------------------------------------------------- #
# PE table (identical formula to the PyTorch PositionalEncoding.__init__)
# --------------------------------------------------------------------------- #
def make_positional_encoding_table(d_model: int, max_len: int = 5000) -> jnp.ndarray:
    position = np.arange(0, max_len, dtype=np.float32)[:, None]              # (max_len, 1)
    div_term = np.exp(
        np.arange(0, d_model, 2, dtype=np.float32) * (-np.log(10000.0) / d_model)
    )                                                                        # (ceil(D/2),)
    pe = np.zeros((max_len, d_model), dtype=np.float32)
    pe[:, 0::2] = np.sin(position * div_term)
    pe[:, 1::2] = np.cos(position * div_term)[:, : d_model // 2]
    return jnp.asarray(pe)


def _choose_row_tile(T: int, row_bytes: int, target_bytes: int = 1 << 20) -> int:
    """Largest row-tile tT that divides T, is a multiple of 8 (sublane rule) and keeps
    tT * row_bytes <= target_bytes.  Falls back to the full extent T when T % 8 != 0
    (a full-extent block dim always satisfies the (8, 128) rule)."""
    if T % 8 != 0:
        return T
    divisors = [d for d in range(8, T + 1, 8) if T % d == 0]
    fitting = [d for d in divisors if d * row_bytes <= target_bytes]
    return max(fitting) if fitting else min(divisors)


# --------------------------------------------------------------------------- #
# 1) Standalone PositionalEncoding:  out = x + pe[:T]   (dropout p=0 -> identity)
# --------------------------------------------------------------------------- #
def _pe_add_kernel(x_ref, pe_ref, o_ref):
    # x_ref / o_ref: (tT, D) tile of one batch element (batch dim squeezed)
    # pe_ref: (tT, D) tile, resident across the inner batch loop
    o_ref[...] = x_ref[...] + pe_ref[...]


def positional_encoding_forward(x: jnp.ndarray, pe: jnp.ndarray) -> jnp.ndarray:
    """x: (B, T, D); pe: (max_len, D). Returns x + pe[:T] (dropout p=0.0)."""
    B, T, D = x.shape
    pe_slice = pe[:T, :].astype(x.dtype)                     # glue: static slice
    tT = _choose_row_tile(T, D * np.dtype(x.dtype).itemsize)

    # NOTE: lane-dense stores require D % 128 == 0 (true for latent_dim=1024 in the
    # real module). For other D the kernel is still correct (full-extent lane dim).
    out = pl.pallas_call(
        _pe_add_kernel,
        out_shape=jax.ShapeDtypeStruct((B, T, D), x.dtype),
        grid_spec=pltpu.PrefetchScalarGridSpec(
            num_scalar_prefetch=0,
            grid=(T // tT, B),                               # batch innermost -> pe resident
            in_specs=[
                pl.BlockSpec((None, tT, D), lambda t, b: (b, t, 0)),   # x tile
                pl.BlockSpec((tT, D), lambda t, b: (t, 0)),            # pe tile
            ],
            out_specs=pl.BlockSpec((None, tT, D), lambda t, b: (b, t, 0)),
        ),
        compiler_params=pltpu.CompilerParams(
            dimension_semantics=("parallel", "parallel"),
        ),
        input_output_aliases={0: 0},                          # in-place add into x's buffer
    )(x, pe_slice)
    return out


# --------------------------------------------------------------------------- #
# 2) Fused InterDenoiser sub-graph:  sequence_pos_encoder(motion_embed(x_a))
#      out = x_a @ W^T + b + pe[:T]
#    (this is the "biggest structural win" from the review: the PE add rides on the
#     embedding matmul, no extra HBM round trip for the (B,T,latent_dim) activation)
# --------------------------------------------------------------------------- #
def _motion_embed_pe_kernel(x_ref, wt_ref, b_ref, pe_ref, o_ref):
    # x_ref: (tT, F); wt_ref: (F, D); b_ref: (1, D); pe_ref: (tT, D); o_ref: (tT, D)
    h = jnp.dot(x_ref[...], wt_ref[...], preferred_element_type=jnp.float32)
    o_ref[...] = (h + b_ref[...] + pe_ref[...]).astype(o_ref.dtype)


def motion_embed_pe_forward(x: jnp.ndarray, weight: jnp.ndarray,
                            bias: jnp.ndarray, pe: jnp.ndarray) -> jnp.ndarray:
    """x: (B, T, F); weight: (D, F) (PyTorch Linear layout); bias: (D,); pe: (max_len, D)."""
    B, T, F = x.shape
    D = weight.shape[0]
    wt = jnp.transpose(weight)                               # (F, D), one-time wrapper glue
    b2 = bias.reshape(1, D)
    pe_slice = pe[:T, :].astype(jnp.float32)
    tT = _choose_row_tile(T, D * np.dtype(x.dtype).itemsize)

    out = pl.pallas_call(
        _motion_embed_pe_kernel,
        out_shape=jax.ShapeDtypeStruct((B, T, D), x.dtype),
        grid_spec=pltpu.PrefetchScalarGridSpec(
            num_scalar_prefetch=0,
            grid=(T // tT, B),                               # batch innermost
            in_specs=[
                pl.BlockSpec((None, tT, F), lambda t, b: (b, t, 0)),   # x row tile
                pl.BlockSpec((F, D), lambda t, b: (0, 0)),             # W^T resident in VMEM
                pl.BlockSpec((1, D), lambda t, b: (0, 0)),             # bias resident
                pl.BlockSpec((tT, D), lambda t, b: (t, 0)),            # pe resident over inner B
            ],
            out_specs=pl.BlockSpec((None, tT, D), lambda t, b: (b, t, 0)),
        ),
        compiler_params=pltpu.CompilerParams(
            dimension_semantics=("parallel", "parallel"),
        ),
    )(x, wt, b2, pe_slice)
    return out


# TODO(synk): the TransformerBlock stack of InterDenoiser is not implemented here
# (its class definition is not part of the provided spec).

if __name__ == "__main__":
    key = jax.random.PRNGKey(0)
    k1, k2, k3, k4 = jax.random.split(key, 4)

    # Small stand-ins for the real module sizes (input_feats=156, latent_dim=1024).
    # latent_dim kept a multiple of 128 for lane-dense stores, as in the real model.
    B, T = 2, 16
    input_feats = 32
    latent_dim = 128
    max_len = 64

    pe = make_positional_encoding_table(latent_dim, max_len)

    # ---- fused motion_embed (Linear) + PositionalEncoding add -----------------
    # Round inputs to bf16-representable values so MXU bf16 passes are exact and
    # the check against a float32 numpy reference is tight.
    x_a = jax.random.normal(k1, (B, T, input_feats), dtype=jnp.float32)
    x_a = x_a.astype(jnp.bfloat16).astype(jnp.float32)
    w = (jax.random.normal(k2, (latent_dim, input_feats), dtype=jnp.float32) * 0.05)
    w = w.astype(jnp.bfloat16).astype(jnp.float32)
    b = (jax.random.normal(k3, (latent_dim,), dtype=jnp.float32) * 0.05)
    b = b.astype(jnp.bfloat16).astype(jnp.float32)

    h_a = motion_embed_pe_forward(x_a, w, b, pe)
    h_a = jax.block_until_ready(h_a)

    ref_h_a = (np.einsum("btf,df->btd", np.asarray(x_a), np.asarray(w))
               + np.asarray(b)[None, None, :]
               + np.asarray(pe[:T, :])[None, :, :])
    np.testing.assert_allclose(np.asarray(h_a), ref_h_a, rtol=1e-3, atol=1e-3)

    # ---- standalone PositionalEncoding (dropout p=0 -> identity) --------------
    x_emb = jax.random.normal(k4, (B, T, latent_dim), dtype=jnp.float32)
    x_emb_host = np.asarray(x_emb)        # host copy BEFORE the aliased (in-place) call
    out = positional_encoding_forward(x_emb, pe)
    out = jax.block_until_ready(out)

    ref = x_emb_host + np.asarray(pe[:T, :])[None, :, :]
    np.testing.assert_allclose(np.asarray(out), ref, rtol=1e-6, atol=1e-6)

    print("KERNEL_OK")
</pallas_src>

<mosaic_0001>
module attributes {stable_mosaic.version = 11 : i64} {
  func.func @_motion_embed_pe_kernel(%arg0: i32, %arg1: i32, %arg2: memref<1x16x32xf32, #tpu.memory_space<vmem>>, %arg3: memref<32x128xf32, #tpu.memory_space<vmem>>, %arg4: memref<1x128xf32, #tpu.memory_space<vmem>>, %arg5: memref<16x128xf32, #tpu.memory_space<vmem>>, %arg6: memref<1x16x128xf32, #tpu.memory_space<vmem>>) attributes {dimension_semantics = [#tpu.dimension_semantics<parallel>, #tpu.dimension_semantics<parallel>], iteration_bounds = array<i64: 1, 2>, scalar_prefetch = 0 : i64, scratch_operands = 0 : i64, tpu.core_type = #tpu.core_type<tc>, window_params = [{transform_indices = @transform_0, window_bounds = array<i64: 1, 16, 32>}, {pipeline_mode = #tpu.pipeline_mode<synchronous>, transform_indices = @transform_1, window_bounds = array<i64: 32, 128>}, {pipeline_mode = #tpu.pipeline_mode<synchronous>, transform_indices = @transform_2, window_bounds = array<i64: 1, 128>}, {transform_indices = @transform_3, window_bounds = array<i64: 16, 128>}, {transform_indices = @transform_4, window_bounds = array<i64: 1, 16, 128>}]} {
    %c0 = arith.constant 0 : index
    %c0_0 = arith.constant 0 : index
    %c0_1 = arith.constant 0 : index
    %0 = vector.load %arg2[%c0, %c0_0, %c0_1] : memref<1x16x32xf32, #tpu.memory_space<vmem>>, vector<1x16x32xf32>
    %1 = vector.shape_cast %0 : vector<1x16x32xf32> to vector<16x32xf32>
    %c0_2 = arith.constant 0 : index
    %c0_3 = arith.constant 0 : index
    %2 = vector.load %arg3[%c0_2, %c0_3] : memref<32x128xf32, #tpu.memory_space<vmem>>, vector<32x128xf32>
    %cst = arith.constant dense<0.000000e+00> : vector<16x128xf32>
    %3 = tpu.matmul %1, %2, %cst {dimension_numbers = #tpu.dot_dimension_numbers<[1], [0], [0], [1], [0, 0, 1, 1], [], []>} : vector<16x32xf32>, vector<32x128xf32>, vector<16x128xf32> -> vector<16x128xf32>
    %c0_4 = arith.constant 0 : index
    %c0_5 = arith.constant 0 : index
    %4 = vector.load %arg4[%c0_4, %c0_5] : memref<1x128xf32, #tpu.memory_space<vmem>>, vector<1x128xf32>
    %5 = vector.broadcast %4 : vector<1x128xf32> to vector<16x128xf32>
    %6 = arith.addf %3, %5 : vector<16x128xf32>
    %c0_6 = arith.constant 0 : index
    %c0_7 = arith.constant 0 : index
    %7 = vector.load %arg5[%c0_6, %c0_7] : memref<16x128xf32, #tpu.memory_space<vmem>>, vector<16x128xf32>
    %8 = arith.addf %6, %7 : vector<16x128xf32>
    %c0_8 = arith.constant 0 : index
    %c0_9 = arith.constant 0 : index
    %c0_10 = arith.constant 0 : index
    %9 = vector.load %arg6[%c0_8, %c0_9, %c0_10] : memref<1x16x128xf32, #tpu.memory_space<vmem>>, vector<1x16x128xf32>
    %10 = vector.shape_cast %9 : vector<1x16x128xf32> to vector<16x128xf32>
    %11 = vector.shape_cast %8 : vector<16x128xf32> to vector<1x16x128xf32>
    tpu.vector_store %arg6[%c0_8, %c0_9, %c0_10], %11 {strides = array<i32>} : memref<1x16x128xf32, #tpu.memory_space<vmem>>, vector<1x16x128xf32>,
    return
  }
  func.func @transform_0(%arg0: i32, %arg1: i32) -> (i32, i32, i32) {
    %c0_i32 = arith.constant 0 : i32
    %c0_i32_0 = arith.constant 0 : i32
    return %arg1, %arg0, %c0_i32 : i32, i32, i32
  }
  func.func @transform_1(%arg0: i32, %arg1: i32) -> (i32, i32) {
    %c0_i32 = arith.constant 0 : i32
    %c0_i32_0 = arith.constant 0 : i32
    %c0_i32_1 = arith.constant 0 : i32
    return %c0_i32, %c0_i32_0 : i32, i32
  }
  func.func @transform_2(%arg0: i32, %arg1: i32) -> (i32, i32) {
    %c0_i32 = arith.constant 0 : i32
    %c0_i32_0 = arith.constant 0 : i32
    %c0_i32_1 = arith.constant 0 : i32
    return %c0_i32, %c0_i32_0 : i32, i32
  }
  func.func @transform_3(%arg0: i32, %arg1: i32) -> (i32, i32) {
    %c0_i32 = arith.constant 0 : i32
    %c0_i32_0 = arith.constant 0 : i32
    return %arg0, %c0_i32 : i32, i32
  }
  func.func @transform_4(%arg0: i32, %arg1: i32) -> (i32, i32, i32) {
    %c0_i32 = arith.constant 0 : i32
    %c0_i32_0 = arith.constant 0 : i32
    return %arg1, %arg0, %c0_i32 : i32, i32, i32
  }
}

</mosaic_0001>

<bundles_post_ra>
// kernel: tpu_custom_call.1
= control target key start
LH: loop header
LB: loop body
LE: loop exit
PB: predicated region body
PF: predicated region fallthrough
CT: control target
= control target key end

     0   :  { %9 = vsyncpa [#allocation3], 0  ;;  %s1109_s0 = inlined_call_operand.hbm [shape: f32[2,16,32], index: 0, kind: input, shape index: {}]   ;;  %s1110_s1 = inlined_call_operand.hbm [shape: f32[32,128], index: 1, kind: input, shape index: {}]   ;;  %s1111_s2 = inlined_call_operand.vmem [shape: f32[1,128], index: 2, kind: input, shape index: {}]   ;;  %s1112_s3 = inlined_call_operand.hbm [shape: f32[16,128], index: 3, kind: input, shape index: {}]   ;;  %s1113_s4 = inlined_call_operand.hbm [shape: f32[2,16,128], index: 4, kind: output, shape index: {}]  }
   0x1   :  { %11 = vsyncpa [#allocation3 + $0x1], 0 }
   0x2   :  { %12 = vsyncpa [#allocation6], 0 }
   0x3   :  { %13 = vsyncpa [#allocation4], 0 }
   0x4   :  { %15 = vsyncpa [#allocation4 + $0x1], 0  ;;  %s842_s15 = smov 0   ;;  %s844_s16 = smov 0  }
   0x5   :  { %s846_s17 = smov 0   ;;  %s848_s18 = smov 0  }
   0x6   :  { %s850_s19 = smov 0   ;;  %s852_s20 = smov 0  }
   0x7 LB: > { %s499_s21 = sadd.s32 4294967295, %s807_s20   ;;  %s500_s22 = sadd.s32 4294967294, %s807_s20   ;;  %s807_s20 = sphi %s852_s20, %s21_s20   ;;  %s803_s19 = sphi %s850_s19, %s1135_s19   ;;  %s799_s18 = sphi %s848_s18, %s1134_s18   ;;  %s795_s17 = sphi %s846_s17, %s1133_s17   ;;  %s791_s16 = sphi %s844_s16, %s1132_s16   ;;  %s787_s15 = sphi %s842_s15, %s1131_s15  }
   0x8   : > { %p55_p0 = scmp.ne.s32.totalorder %s791_s16, %s787_s15  ;;  %p876_p1 = scmp.eq.s32.totalorder %s499_s21, 0 }
   0x9   : > { %p880_p2 = scmp.eq.s32.totalorder %s499_s21, 1  ;;  %p155_p3 = scmp.eq.s32.totalorder %s500_s22, 1 }
   0xa   : > { %s1118_s23 = scalar_select %p876_p1, 1, 0 }
   0xb   : > { %p886_p4 = por %p876_p1, %p55_p0  ;;  %p501_p5 = scmp.ge.s32.totalorder %s807_s20, 1 }
   0xc   : > { %p891_p6 = por %p155_p3, %p55_p0  ;;  %p162_p7 = scmp.lt.s32.totalorder %s807_s20, 3 }
   0xd   : > { %s1120_s25 = scalar_select %p886_p4, 1, 0 }
   0xe   : > { %s1121_s26 = scalar_select %p891_p6, 1, 0 }
   0xf   : > { %p896_p8 = pnand %p501_p5, %p162_p7  ;;  %s809_s28 = smov [#allocation5]  }
  0x10   : > { %s174_s29 = sshll.u32 %s809_s28, 4  ;;  %s810_s5 = smov [#allocation7]   ;;  %s900_s29 = int_to_ptr.vmem [resolvable:$true] %s174_s29 }
  0x11   : > { %p560_p9 = pneg %p896_p8  ;;  %s193_s6 = sshll.u32 %s810_s5, 4  ;;  %s911_s6 = int_to_ptr.vmem [resolvable:$true] %s193_s6 }
  0x12   : > { %s635_s9 = scalar_lea.hbm %s1110_s1, 512 }
  0x13   : > { %p907_p11 = pnand %p560_p9, %p876_p1  ;;  %p636_p12 = scmp.ne.s32.totalorder %s1110_s1, %s635_s9 }
  0x14   : > { %p642_p5 = scmp.lt.u32.totalorder %s635_s9, %s1110_s1 }
  0x15   : > { %p637_p13 = pneg %p907_p11 }
  0x17   : > { %p638_p0 = pnand %p637_p13, %p636_p12 }
  0x19   : > { %p639_p3 = pneg %p638_p0 }
  0x1b   : > { %p644_p7 = pnand %p642_p5, %p639_p3 }
  0x1d   : > { %647 = shalt.err (!%p644_p7)
}
  0x1e   : > { %s648_s14 = scalar_lea.vmem %s900_s29, 512  ;;  %p656_p1 = scmp.lt.s32.totalorder %s900_s29, %s900_s29 }
  0x1f   : > { %p649_p9 = scmp.ne.s32.totalorder %s900_s29, %s648_s14  ;;  %p657_p12 = scmp.lt.s32.totalorder %s648_s14, %s648_s14 }
  0x21   : > { %p651_p10 = pnand %p649_p9, %p637_p13  ;;  %p658_p0 = por %p657_p12, %p656_p1 }
  0x23   : > { %p652_p6 = pneg %p651_p10 }
  0x25   : > { %p659_p4 = pnand %p658_p0, %p652_p6 }
  0x27   : > { %662 = shalt.err (!%p659_p4)
}
  0x28   : > { %s811_s21 = smov 128   ;;  %s812_s22 = smov 8  }
  0x29   : > { %563 = dma.hbm_to_vmem [thread:$0]  (!%p907_p11), %s1110_s1, 512, %s900_s29, [#allocation6], %s811_s21, %s811_s21, %s812_s22  }
  0x2a   : > { %s663_s9 = scalar_lea.hbm %s1112_s3, 256 }
  0x2b   : > { %p664_p1 = scmp.ne.s32.totalorder %s1112_s3, %s663_s9  ;;  %p670_p10 = scmp.lt.u32.totalorder %s663_s9, %s1112_s3 }
  0x2d   : > { %p666_p4 = pnand %p664_p1, %p637_p13 }
  0x2f   : > { %p667_p6 = pneg %p666_p4 }
  0x31   : > { %p672_p3 = pnand %p670_p10, %p667_p6 }
  0x33   : > { %675 = shalt.err (!%p672_p3)
}
  0x34   : > { %s676_s29 = scalar_lea.vmem %s911_s6, 256  ;;  %p684_p12 = scmp.lt.s32.totalorder %s911_s6, %s911_s6 }
  0x35   : > { %p677_p5 = scmp.ne.s32.totalorder %s911_s6, %s676_s29  ;;  %p685_p0 = scmp.lt.s32.totalorder %s676_s29, %s676_s29 }
  0x37   : > { %p679_p7 = pnand %p677_p5, %p637_p13  ;;  %p686_p1 = por %p685_p0, %p684_p12 }
  0x39   : > { %p680_p9 = pneg %p679_p7 }
  0x3b   : > { %p687_p4 = pnand %p686_p1, %p680_p9 }
  0x3d   : > { %690 = shalt.err (!%p687_p4)
}
  0x3e   : > { %566 = dma.hbm_to_vmem [thread:$0]  (!%p907_p11), %s1112_s3, 256, %s911_s6, [#allocation6], %s811_s21, %s811_s21, %s812_s22  }
  0x3f   : > { %s30_s30 = sadd.s32 1, %s803_s19  ;;  %s42_s5 = sadd.s32 1, %s795_s17 }
  0x40   : > { %p31_p13 = scmp.ge.s32.totalorder %s30_s30, 2  ;;  %p49_p6 = scmp.ne.s32.totalorder %s795_s17, %s791_s16 }
  0x41   : > { %p50_p10 = scmp.eq.s32.totalorder %s807_s20, 0  ;;  %p577_p3 = scmp.lt.s32.totalorder %s807_s20, 2 }
  0x42   : > { %s1137_s30 = smov (%p31_p13, %s30_s30), 0  ;;  %p981_p7 = por %p880_p2, %p49_p6 }
  0x43   : > { %p51_p5 = por %p50_p10, %p49_p6  ;;  %s37_s8 = ssub.s32 %s803_s19, %s1137_s30 }
  0x44   : > { %s1124_s7 = scalar_select %p981_p7, 1, 0 }
  0x45   : > { %s207_s9 = sand.u32 1, %s795_s17   ;;  %p40_p9 = scmp.eq.s32.totalorder %s37_s8, 0 }
  0x46   : > { %s505_s6 = sshll.u32 %s207_s9, 4  ;;  %s521_s10 = sshll.u32 %s803_s19, 8 }
  0x47   : > { %s990_s11 = scalar_select %p40_p9, %s795_s17, %s42_s5  }
  0x48   : > { %s995_s29 = scalar_lea.hbm %s1109_s0, %s521_s10  ;;  %s211_s24 = scalar_lea.vmem [#allocation2], %s505_s6 }
  0x49   : > { %s220_s14 = sshll.u32 %s211_s24, 4  ;;  %p999_p2 = pnand %p577_p3, %p51_p5  ;;  %s1003_s14 = int_to_ptr.vmem [resolvable:$true] %s220_s14 }
  0x4a   : > { %s1005_s5 = scalar_lea.sflag [#allocation3], %s207_s9  ;;  %s691_s8 = scalar_lea.hbm %s995_s29, 256 }
  0x4b   : > { %p692_p11 = scmp.ne.s32.totalorder %s995_s29, %s691_s8  ;;  %p693_p12 = pneg %p999_p2 }
  0x4c   : > { %s696_s12 = scalar_lea.hbm %s1109_s0, 512  ;;  %p697_p4 = scmp.lt.u32.totalorder %s995_s29, %s1109_s0 }
  0x4d   : > { %p694_p0 = pnand %p693_p12, %p692_p11  ;;  %p698_p13 = scmp.lt.u32.totalorder %s696_s12, %s691_s8 }
  0x4e   : > { %p700_p10 = scmp.lt.u32.totalorder %s691_s8, %s995_s29 }
  0x4f   : > { %p695_p1 = pneg %p694_p0  ;;  %p699_p6 = por %p698_p13, %p697_p4 }
  0x51   : > { %p701_p3 = por %p700_p10, %p699_p6 }
  0x53   : > { %p702_p5 = pnand %p701_p3, %p695_p1 }
  0x55   : > { %705 = shalt.err (!%p702_p5)
}
  0x56   : > { %s706_s9 = scalar_lea.vmem %s1003_s14, 256  ;;  %s813_s6 = smov [#allocation2]  }
  0x57   : > { %p707_p9 = scmp.ne.s32.totalorder %s1003_s14, %s706_s9  ;;  %s711_s10 = sshll.u32 %s813_s6, 4  ;;  %s712_s10 = int_to_ptr.vmem [resolvable:$false] %s711_s10 }
  0x58   : > { %s713_s13 = scalar_lea.vmem %s712_s10, 512  ;;  %p714_p7 = scmp.lt.s32.totalorder %s1003_s14, %s712_s10 }
  0x59   : > { %p709_p11 = pnand %p707_p9, %p693_p12  ;;  %p715_p4 = scmp.lt.s32.totalorder %s713_s13, %s706_s9 }
  0x5b   : > { %p710_p0 = pneg %p709_p11  ;;  %p716_p13 = por %p715_p4, %p714_p7 }
  0x5d   : > { %p717_p6 = pnand %p716_p13, %p710_p0 }
  0x5f   : > { %720 = shalt.err (!%p717_p6)
}
  0x60   : > { %570 = dma.hbm_to_vmem [thread:$0]  (!%p999_p2), %s995_s29, 256, %s1003_s14, %s1005_s5, %s811_s21, %s811_s21, %s812_s22  }
  0x61   : > { %232 = sbr.rel (%p896_p8) target bundleno = 351 (0x15f), region = 36  ;;  %s1039_s8 = sand.u32 (!%p896_p8), 1, %s791_s16  }
  0x62   : > { %s509_s12 = sshll.u32 (!%p896_p8), %s1039_s8, 4  ;;  %s235_s24 = scalar_lea.sflag (!%p896_p8), [#allocation3], %s1039_s8 }
  0x63   : > { %s238_s9 = scalar_lea.vmem (!%p896_p8), [#allocation2], %s509_s12  ;;  %p1126_p7 = scmp.ne.s32.totalorder (!%p896_p8), %s1120_s25, 0 }
  0x68   : > { %774 = dma.done.wait (%p1126_p7), %s235_s24, 256  }
  0x69   : > { %776 = vsyncadd (%p1126_p7), %s235_s24, 4294967040  ;;  %p1127_p12 = scmp.ne.s32.totalorder %s1118_s23, 0 }
  0x6b   : > { %778 = dma.done.wait (%p1127_p12), [#allocation6], 768  }
  0x6c   : > { %780 = vsyncadd (%p1127_p12), [#allocation6], 4294966528  ;;  %vm287_vm0 = vcmask 261120   ;;  %v276_v0 = vld [vmem:[#allocation5] sm:$0xff]  ;;  %v277_v1 = vld [vmem:[#allocation5 + $0x8] sm:$0xff]  ;;  %s270_s23 = scalar_lea.vmem [#allocation8], %s509_s12 }
  0x6d   : > { %v278_v2 = vld [vmem:[#allocation5 + $0x10] sm:$0xff]  ;;  %v540_v3 = vpack.c.bf16 %v277_v1, %v276_v0  ;;  %v279_v4 = vld [vmem:[#allocation5 + $0x18] sm:$0xff]  ;;  %v513_v8 = vld [vmem:[%s1111_s2] ss:$0 sm:$0xff]  ;;  %s391_s21 = sshll.u32 %s270_s23, 4  ;;  %s522_s22 = sshll.u32 %s799_s18, 8  ;;  %s1055_s21 = int_to_ptr.vmem [resolvable:$true] %s391_s21 }
  0x6e   : > { %v274_v5 = vld [vmem:[%s238_s9] sm:$0xff]  ;;  %v544_v6 = vpack.c.bf16 %v279_v4, %v278_v2  ;;  %v275_v7 = vld [vmem:[%s238_s9 + $0x8] sm:$0xff]  ;;  %s1060_s28 = scalar_lea.hbm %s1113_s4, %s522_s22  ;;  %s376_s5 = scalar_lea.sflag [#allocation4], %s1039_s8 }
  0x6f   : > { %537 = vmatprep.mubr.msk.f32.mxu0 %vm287_vm0, %v274_v5  ;;  %541 = vmatprep.subr.bf16.mxu0 %v540_v3  ;;  %v370_v10 = vld [vmem:[#allocation7 + $0x8] sm:$0xff]  ;;  %v369_v13 = vld [vmem:[#allocation7] sm:$0xff]  ;;  %s721_s18 = scalar_lea.vmem %s1055_s21, 256  ;;  %p1128_p2 = scmp.ne.s32.totalorder %s1124_s7, 0 }
  0x70   : > { %543 = vmatpush3.bf16.msra.mxu0 %v540_v3  ;;  %p722_p8 = scmp.ne.s32.totalorder %s1055_s21, %s721_s18  ;;  %s814_s6 = smov [#allocation8]  }
  0x71   : > { %545 = vmatprep.subr.bf16.mxu0 %v544_v6  ;;  %s725_s10 = sshll.u32 %s814_s6, 4  ;;  %s726_s10 = int_to_ptr.vmem [resolvable:$false] %s725_s10 }
  0x72   : > { %p723_p1 = pnand %p722_p8, %p1128_p2  ;;  %s727_s13 = scalar_lea.vmem %s726_s10, 512 }
  0x73   : > { %p728_p3 = scmp.lt.s32.totalorder %s1055_s21, %s726_s10  ;;  %p729_p5 = scmp.lt.s32.totalorder %s727_s13, %s721_s18 }
  0x74   : > { %547 = vmatpush3.bf16.msra.mxu0 %v544_v6  ;;  %p724_p10 = pneg %p723_p1 }
  0x75   : > { %p730_p9 = por %p729_p5, %p728_p3 }
  0x77   : > { %538 = vmatmul.mubr.msk.f32.vlgmr.msra.gmra.mrb[0].mxu0 %vm287_vm0, %v275_v7  ;;  %p731_p11 = pnand %p730_p9, %p724_p10 }
 0x14a   : > { %v539_v9 = vpop.f32.mrb[0].mxu0 }
 0x14b   : > { %v366_v11 = vadd.f32 %v539_v9, %v513_v8  ;;  %v360_v12 = vpop.f32.mrb[1].mxu0 }
 0x14c   : > { %v361_v14 = vadd.f32 %v513_v8, %v360_v12 }
 0x14d   : > { %v372_v15 = vadd.f32 %v370_v10, %v366_v11 }
 0x14e   : > { %v371_v16 = vadd.f32 %v369_v13, %v361_v14 }
 0x14f   : > { %374 = vst [vmem:[%s270_s23 + $0x8] sm:$0xff] %v372_v15 }
 0x150   : > { %373 = vst [vmem:[%s270_s23] sm:$0xff] %v371_v16 }
 0x151   : > { %734 = shalt.err (!%p731_p11)
}
 0x152   : > { %s735_s12 = scalar_lea.hbm %s1060_s28, 256  ;;  %s739_s25 = scalar_lea.hbm %s1113_s4, 512 }
 0x153   : > { %p736_p0 = scmp.ne.s32.totalorder %s1060_s28, %s735_s12  ;;  %p740_p6 = scmp.lt.u32.totalorder %s1060_s28, %s1113_s4 }
 0x154   : > { %p741_p7 = scmp.lt.u32.totalorder %s739_s25, %s735_s12  ;;  %p743_p8 = scmp.lt.u32.totalorder %s735_s12, %s1060_s28 }
 0x155   : > { %p737_p4 = pnand %p736_p0, %p1128_p2 }
 0x156   : > { %p742_p12 = por %p741_p7, %p740_p6 }
 0x157   : > { %p738_p13 = pneg %p737_p4 }
 0x158   : > { %p744_p1 = por %p743_p8, %p742_p12 }
 0x15a   : > { %p745_p10 = pnand %p744_p1, %p738_p13 }
 0x15c   : > { %748 = shalt.err (!%p745_p10)
}
 0x15d   : > { %s815_s22 = smov 128   ;;  %s816_s29 = smov 8  }
 0x15e   : > { %558 = dma.vmem_to_hbm [thread:$0]  (%p1128_p2), %s1055_s21, 256, %s1060_s28, %s376_s5, %s815_s22, %s815_s22, %s816_s29  }
 0x15f PF: > { %s406_s14 = sand.u32 1, %s787_s15   ;;  %p1129_p3 = scmp.ne.s32.totalorder %s1121_s26, 0 }
 0x160   : > { %p1130_p5 = scmp.ge.s32.totalorder %s807_s20, 2  ;;  %s407_s18 = scalar_lea.sflag [#allocation4], %s406_s14 }
 0x162   : > { %p572_p9 = pnand %p1130_p5, %p1129_p3 }
 0x164   : > { %782 = dma.done.wait (!%p572_p9), %s407_s18, 256  }
 0x165   : > { %784 = vsyncadd (!%p572_p9), %s407_s18, 4294967040  ;;  %s21_s20 = sadd.s32 1, %s807_s20   ;;  %s1131_s15 = smov %s791_s16 }
 0x166   : > { %p18_p11 = scmp.ge.s32.totalorder %s21_s20, 4   ;;  %s1132_s16 = smov %s795_s17 }
 0x167   : > { %s1133_s17 = smov %s990_s11  ;;  %s1134_s18 = smov %s803_s19 }
 0x168   : > { %s1135_s19 = smov %s1137_s30  ;;  %20 = sbr.rel (!%p18_p11) target bundleno = 7 (0x7), region = 90 }
 0x16f   :  { %412 = vsyncpa [#allocation3], 1 }
 0x170   :  { %414 = vsyncpa [#allocation3 + $0x1], 1 }
 0x171   :  { %415 = vsyncpa [#allocation6], 1 }
 0x172   :  { %416 = vsyncpa [#allocation4], 1 }
 0x173   :  { %418 = vsyncpa [#allocation4 + $0x1], 1 }

</bundles_post_ra>
